<compile_context>
chip_gen: v7x
topology: tpu7x:2x2x1
jax: 0.10.0
libtpu: 0.0.40
codegen_flags: <defaults>
</compile_context>

<pallas_src>
import functools

import jax
import jax.numpy as jnp
from jax.experimental import pallas as pl
from jax.experimental.pallas import tpu as pltpu

ALPHA = 2
GAMMA = 4
LAMBDA_REG = 1
LAMBDA_CENTER = 1

_LANES = 128
_N_SLICES = 2   # parallel grid slices: v7x megacore; harmless loop on v5e/v6e


def _loss_kernel(pred_ref, cls_ref, reg_ref, ctr_ref, out_ref, acc_ref, *,
                 num_class, t_rows, tiles_per_slice, hw, needs_mask):
    """Accumulates per-pixel partials for [focal, factorized-reg, bce]."""
    p = pl.program_id(0)
    i = pl.program_id(1)

    @pl.when(i == 0)
    def _():
        acc_ref[...] = jnp.zeros_like(acc_ref)

    cls_gt = cls_ref[...].astype(jnp.float32)                  # (B, T, 128)

    # ---- classification focal loss (summed over classes and batch) ----
    fl_total = jnp.zeros((t_rows, _LANES), jnp.float32)
    for c in range(num_class):
        t = cls_gt == jnp.float32(c + 1)
        prob = pred_ref[:, c, :, :].astype(jnp.float32)
        q = jnp.where(t, prob, 1.0 - prob)
        fl = -ALPHA * (1.0 - q) ** GAMMA * jnp.log(q)          # unguarded (torch)
        fl_total = fl_total + jnp.sum(fl, axis=0)              # leading-axis add
    acc_ref[0, :, :] += fl_total

    # ---- IoU regression loss ----
    d1g = reg_ref[:, 0, :, :].astype(jnp.float32)
    d2g = reg_ref[:, 1, :, :].astype(jnp.float32)
    d3g = reg_ref[:, 2, :, :].astype(jnp.float32)
    d4g = reg_ref[:, 3, :, :].astype(jnp.float32)
    d1p = pred_ref[:, num_class + 0, :, :].astype(jnp.float32)
    d2p = pred_ref[:, num_class + 1, :, :].astype(jnp.float32)
    d3p = pred_ref[:, num_class + 2, :, :].astype(jnp.float32)
    d4p = pred_ref[:, num_class + 3, :, :].astype(jnp.float32)
    area_gt = (d1g + d3g) * (d2g + d4g)
    area_pr = (d1p + d3p) * (d2p + d4p)
    w_u = jnp.minimum(d3g, d3p) + jnp.minimum(d1g, d1p)
    h_u = jnp.minimum(d2g, d2p) + jnp.minimum(d4g, d4p)
    inter = w_u * h_u
    union = area_gt + area_pr - inter
    iou = -jnp.log((inter + 1.0) / (union + 1.0))              # (B, T, 128)
    pos = (cls_gt > 0.0).astype(jnp.float32)
    # torch broadcast (B,1,H,W)*(B,H,W)->(B,B,H,W); per-pixel sum factorizes.
    acc_ref[1, :, :] += jnp.sum(iou, axis=0) * jnp.sum(pos, axis=0)

    # ---- center BCE-with-logits (numerically stable form) ----
    x = pred_ref[:, num_class + 4, :, :].astype(jnp.float32)
    cgt = ctr_ref[...].astype(jnp.float32)
    bce = jnp.maximum(x, 0.0) - x * cgt + jnp.log(1.0 + jnp.exp(-jnp.abs(x)))
    if needs_mask:
        # Zero padded pixels (cls/reg zero-pads already contribute exactly 0).
        base_row = (p * tiles_per_slice + i) * t_rows
        row_ids = jax.lax.broadcasted_iota(jnp.int32, (t_rows, _LANES), 0)
        lane_ids = jax.lax.broadcasted_iota(jnp.int32, (t_rows, _LANES), 1)
        flat = (base_row + row_ids) * _LANES + lane_ids
        bce = jnp.where((flat < hw)[None, :, :], bce, 0.0)
    acc_ref[2, :, :] += jnp.sum(bce, axis=0)

    # ---- finalize once per slice: cross-sublane reduce + lane-dense store ----
    @pl.when(i == pl.num_programs(1) - 1)
    def _():
        rows = [jnp.sum(acc_ref[k, :, :], axis=0, keepdims=True)
                for k in range(3)]                             # 3 x (1, 128)
        out_ref[...] = jnp.concatenate(rows, axis=0)[None, :, :]


def _round_up(x, m):
    return (x + m - 1) // m * m


def _plan_tiles(hw, bytes_per_row, n_slices, max_rows=512,
                buf_budget_bytes=16 << 20):
    """Pick (t_rows, tiles_per_slice, rows_pad); rows of 128 lanes, t_rows % 8 == 0."""
    rows = -(-hw // _LANES)
    cap = min(max_rows, buf_budget_bytes // (2 * bytes_per_row))
    cap = max(8, (cap // 8) * 8)
    tiles_total = _round_up(-(-rows // cap), n_slices)
    t_rows = _round_up(-(-rows // tiles_total), 8)
    rows_pad = tiles_total * t_rows
    return t_rows, tiles_total // n_slices, rows_pad


def loss_forward(predict, target, num_class,
                 lambda_reg=LAMBDA_REG, lambda_center=LAMBDA_CENTER):
    cls_gt, reg_gt, center_gt = target
    B, C, H, W = predict.shape
    assert C == num_class + 4 + 1
    HW = H * W

    bytes_per_row = B * (C + 6) * _LANES * 4        # all f32 inputs per 128-px row
    t_rows, tiles_per_slice, rows_pad = _plan_tiles(HW, bytes_per_row, _N_SLICES)
    hw_pad = rows_pad * _LANES
    pad = hw_pad - HW
    needs_mask = pad != 0

    # NCHW -> flattened, (rows, 128)-blocked lane/sublane-dense layout.
    predict_f = predict.reshape(B, C, HW)
    cls_f = cls_gt.reshape(B, HW)
    reg_f = reg_gt.reshape(B, 4, HW)
    ctr_f = center_gt.reshape(B, HW)
    if pad:
        predict_f = jnp.pad(predict_f, ((0, 0), (0, 0), (0, pad)))
        cls_f = jnp.pad(cls_f, ((0, 0), (0, pad)))
        reg_f = jnp.pad(reg_f, ((0, 0), (0, 0), (0, pad)))
        ctr_f = jnp.pad(ctr_f, ((0, 0), (0, pad)))
    predict_r = predict_f.reshape(B, C, rows_pad, _LANES)
    cls_r = cls_f.reshape(B, rows_pad, _LANES)
    reg_r = reg_f.reshape(B, 4, rows_pad, _LANES)
    ctr_r = ctr_f.reshape(B, rows_pad, _LANES)

    kernel = functools.partial(
        _loss_kernel, num_class=num_class, t_rows=t_rows,
        tiles_per_slice=tiles_per_slice, hw=HW, needs_mask=needs_mask)

    idx4 = lambda p, i: (0, 0, p * tiles_per_slice + i, 0)
    idx3 = lambda p, i: (0, p * tiles_per_slice + i, 0)

    partials = pl.pallas_call(
        kernel,
        out_shape=jax.ShapeDtypeStruct((_N_SLICES, 3, _LANES), jnp.float32),
        grid_spec=pltpu.PrefetchScalarGridSpec(
            num_scalar_prefetch=0,
            grid=(_N_SLICES, tiles_per_slice),
            in_specs=[
                pl.BlockSpec((B, C, t_rows, _LANES), idx4),
                pl.BlockSpec((B, t_rows, _LANES), idx3),
                pl.BlockSpec((B, 4, t_rows, _LANES), idx4),
                pl.BlockSpec((B, t_rows, _LANES), idx3),
            ],
            out_specs=pl.BlockSpec((1, 3, _LANES), lambda p, i: (p, 0, 0)),
            scratch_shapes=[pltpu.VMEM((3, t_rows, _LANES), jnp.float32)],
        ),
        compiler_params=pltpu.CompilerParams(
            dimension_semantics=("parallel", "arbitrary"),
            vmem_limit_bytes=40 * 1024 * 1024,
        ),
    )(predict_r, cls_r, reg_r, ctr_r)

    # tiny glue: reduce the lane-wise partials and normalize the three terms.
    sums = jnp.sum(partials, axis=(0, 2))           # (3,)
    n_elem = B * H * W
    cls_loss = sums[0] / n_elem
    reg_loss = sums[1] / (B * B * H * W)            # mean over broadcast (B,B,H,W)
    center_loss = sums[2] / n_elem                  # legacy reduce='sum' => 'mean'
    total = cls_loss + lambda_reg * reg_loss + lambda_center * center_loss
    return total, cls_loss, reg_loss, center_loss


def ref_loss(predict, target, num_class, alpha=ALPHA, gamma=GAMMA,
             lambda_reg=LAMBDA_REG, lambda_center=LAMBDA_CENTER):
    """Pure-JAX transliteration of the PyTorch forward (for verification)."""
    cls_gt, reg_gt, center_gt = target
    cls_pred = predict[:, :num_class]
    reg_pred = predict[:, num_class:num_class + 4]
    center_pred = predict[:, num_class + 4:num_class + 5]

    pos_ids = (cls_gt > 0).astype(jnp.float32)

    cls_loss = jnp.float32(0.0)
    for i in range(1, num_class + 1):
        tgt = cls_gt * (cls_gt == i)
        tgt = (tgt > 0).astype(jnp.float32)
        p = cls_pred[:, i - 1]
        fl = (-alpha * tgt * (1 - p) ** gamma * jnp.log(p)
              - alpha * (1 - tgt) * p ** gamma * jnp.log(1 - p))
        cls_loss = cls_loss + fl.mean()

    d1g, d2g, d3g, d4g = jnp.split(reg_gt, 4, axis=1)
    d1p, d2p, d3p, d4p = jnp.split(reg_pred, 4, axis=1)
    area_gt = (d1g + d3g) * (d2g + d4g)
    area_pr = (d1p + d3p) * (d2p + d4p)
    w_u = jnp.minimum(d3g, d3p) + jnp.minimum(d1g, d1p)
    h_u = jnp.minimum(d2g, d2p) + jnp.minimum(d4g, d4p)
    inter = w_u * h_u
    union = area_gt + area_pr - inter
    iou = -jnp.log((inter + 1) / (union + 1))              # (B,1,H,W)
    reg_loss = (iou * pos_ids).mean()                      # broadcasts like torch

    x = jnp.squeeze(center_pred, 1)
    y = center_gt
    bce = jnp.maximum(x, 0.0) - x * y + jnp.log(1.0 + jnp.exp(-jnp.abs(x)))
    center_loss = bce.mean()

    total = cls_loss + lambda_reg * reg_loss + lambda_center * center_loss
    return total, cls_loss, reg_loss, center_loss


if __name__ == "__main__":
    key = jax.random.PRNGKey(0)
    B, H, W = 2, 16, 16
    num_class = 3
    k1, k2, k3, k4, k5, k6 = jax.random.split(key, 6)

    # predict = [cls probs (in (0,1)) | reg distances (>0) | center logits]
    cls_pred = jax.nn.sigmoid(jax.random.normal(k1, (B, num_class, H, W), jnp.float32))
    cls_pred = jnp.clip(cls_pred, 1e-4, 1.0 - 1e-4)
    reg_pred = jax.random.uniform(k2, (B, 4, H, W), jnp.float32, 0.1, 4.0)
    center_pred = jax.random.normal(k3, (B, 1, H, W), jnp.float32)
    predict = jnp.concatenate([cls_pred, reg_pred, center_pred], axis=1)

    cls_gt = jax.random.randint(k4, (B, H, W), 0, num_class + 1).astype(jnp.float32)
    reg_gt = jax.random.uniform(k5, (B, 4, H, W), jnp.float32, 0.1, 4.0)
    center_gt = jax.random.bernoulli(k6, 0.5, (B, H, W)).astype(jnp.float32)

    target = (cls_gt, reg_gt, center_gt)

    out = loss_forward(predict, target, num_class)
    out = jax.block_until_ready(out)

    ref = ref_loss(predict, target, num_class)
    for got, want in zip(out, ref):
        g, w = float(got), float(want)
        assert abs(g - w) <= 1e-4 * max(1.0, abs(w)), (g, w)

    print("KERNEL_OK")
</pallas_src>

<mosaic_0001>
module attributes {stable_mosaic.version = 11 : i64} {
  func.func @_loss_kernel(%arg0: i32, %arg1: i32, %arg2: memref<2x8x8x128xf32, #tpu.memory_space<vmem>>, %arg3: memref<2x8x128xf32, #tpu.memory_space<vmem>>, %arg4: memref<2x4x8x128xf32, #tpu.memory_space<vmem>>, %arg5: memref<2x8x128xf32, #tpu.memory_space<vmem>>, %arg6: memref<1x3x128xf32, #tpu.memory_space<vmem>>, %arg7: memref<3x8x128xf32, #tpu.memory_space<vmem>>) attributes {dimension_semantics = [#tpu.dimension_semantics<parallel>, #tpu.dimension_semantics<arbitrary>], iteration_bounds = array<i64: 2, 1>, scalar_prefetch = 0 : i64, scratch_operands = 1 : i64, tpu.core_type = #tpu.core_type<tc>, window_params = [{transform_indices = @transform_0, window_bounds = array<i64: 2, 8, 8, 128>}, {transform_indices = @transform_1, window_bounds = array<i64: 2, 8, 128>}, {transform_indices = @transform_2, window_bounds = array<i64: 2, 4, 8, 128>}, {transform_indices = @transform_3, window_bounds = array<i64: 2, 8, 128>}, {transform_indices = @transform_4, window_bounds = array<i64: 1, 3, 128>}]} {
    %c0_i32 = arith.constant 0 : i32
    %0 = arith.cmpi eq, %arg1, %c0_i32 : i32
    %1 = arith.extui %0 : i1 to i32
    %c0_i32_0 = arith.constant 0 : i32
    %2 = arith.cmpi ne, %1, %c0_i32_0 : i32
    scf.if %2 {
      %cst_93 = arith.constant 0.000000e+00 : f32
      %156 = vector.broadcast %cst_93 : f32 to vector<3x8x128xf32>
      %c0_94 = arith.constant 0 : index
      %c0_95 = arith.constant 0 : index
      %c0_96 = arith.constant 0 : index
      %157 = vector.load %arg7[%c0_94, %c0_95, %c0_96] : memref<3x8x128xf32, #tpu.memory_space<vmem>>, vector<3x8x128xf32>
      tpu.vector_store %arg7[%c0_94, %c0_95, %c0_96], %156 {strides = array<i32>} : memref<3x8x128xf32, #tpu.memory_space<vmem>>, vector<3x8x128xf32>,
    } else {
    }
    %c0 = arith.constant 0 : index
    %c0_1 = arith.constant 0 : index
    %c0_2 = arith.constant 0 : index
    %3 = vector.load %arg3[%c0, %c0_1, %c0_2] : memref<2x8x128xf32, #tpu.memory_space<vmem>>, vector<2x8x128xf32>
    %cst = arith.constant 0.000000e+00 : f32
    %4 = vector.broadcast %cst : f32 to vector<8x128xf32>
    %cst_3 = arith.constant 1.000000e+00 : f32
    %5 = vector.broadcast %cst_3 : f32 to vector<2x8x128xf32>
    %6 = arith.cmpf oeq, %3, %5 : vector<2x8x128xf32>
    %c0_4 = arith.constant 0 : index
    %c0_5 = arith.constant 0 : index
    %c0_6 = arith.constant 0 : index
    %c0_7 = arith.constant 0 : index
    %7 = vector.load %arg2[%c0_4, %c0_5, %c0_6, %c0_7] : memref<2x8x8x128xf32, #tpu.memory_space<vmem>>, vector<2x1x8x128xf32>
    %8 = vector.shape_cast %7 : vector<2x1x8x128xf32> to vector<2x8x128xf32>
    %cst_8 = arith.constant 1.000000e+00 : f32
    %9 = vector.broadcast %cst_8 : f32 to vector<2x8x128xf32>
    %10 = arith.subf %9, %8 : vector<2x8x128xf32>
    %11 = arith.select %6, %8, %10 : vector<2x8x128xi1>, vector<2x8x128xf32>
    %cst_9 = arith.constant 1.000000e+00 : f32
    %12 = vector.broadcast %cst_9 : f32 to vector<2x8x128xf32>
    %13 = arith.subf %12, %11 : vector<2x8x128xf32>
    %14 = arith.mulf %13, %13 : vector<2x8x128xf32>
    %15 = arith.mulf %14, %14 : vector<2x8x128xf32>
    %cst_10 = arith.constant -2.000000e+00 : f32
    %16 = vector.broadcast %cst_10 : f32 to vector<2x8x128xf32>
    %17 = arith.mulf %16, %15 : vector<2x8x128xf32>
    %18 = math.log %11 : vector<2x8x128xf32>
    %19 = arith.mulf %17, %18 : vector<2x8x128xf32>
    %cst_11 = arith.constant dense<0.000000e+00> : vector<8x128xf32>
    %20 = vector.multi_reduction <add>, %19, %cst_11 [0] : vector<2x8x128xf32> to vector<8x128xf32>
    %21 = arith.addf %4, %20 : vector<8x128xf32>
    %cst_12 = arith.constant 2.000000e+00 : f32
    %22 = vector.broadcast %cst_12 : f32 to vector<2x8x128xf32>
    %23 = arith.cmpf oeq, %3, %22 : vector<2x8x128xf32>
    %c0_13 = arith.constant 0 : index
    %c1 = arith.constant 1 : index
    %c0_14 = arith.constant 0 : index
    %c0_15 = arith.constant 0 : index
    %24 = vector.load %arg2[%c0_13, %c1, %c0_14, %c0_15] : memref<2x8x8x128xf32, #tpu.memory_space<vmem>>, vector<2x1x8x128xf32>
    %25 = vector.shape_cast %24 : vector<2x1x8x128xf32> to vector<2x8x128xf32>
    %cst_16 = arith.constant 1.000000e+00 : f32
    %26 = vector.broadcast %cst_16 : f32 to vector<2x8x128xf32>
    %27 = arith.subf %26, %25 : vector<2x8x128xf32>
    %28 = arith.select %23, %25, %27 : vector<2x8x128xi1>, vector<2x8x128xf32>
    %cst_17 = arith.constant 1.000000e+00 : f32
    %29 = vector.broadcast %cst_17 : f32 to vector<2x8x128xf32>
    %30 = arith.subf %29, %28 : vector<2x8x128xf32>
    %31 = arith.mulf %30, %30 : vector<2x8x128xf32>
    %32 = arith.mulf %31, %31 : vector<2x8x128xf32>
    %cst_18 = arith.constant -2.000000e+00 : f32
    %33 = vector.broadcast %cst_18 : f32 to vector<2x8x128xf32>
    %34 = arith.mulf %33, %32 : vector<2x8x128xf32>
    %35 = math.log %28 : vector<2x8x128xf32>
    %36 = arith.mulf %34, %35 : vector<2x8x128xf32>
    %cst_19 = arith.constant dense<0.000000e+00> : vector<8x128xf32>
    %37 = vector.multi_reduction <add>, %36, %cst_19 [0] : vector<2x8x128xf32> to vector<8x128xf32>
    %38 = arith.addf %21, %37 : vector<8x128xf32>
    %cst_20 = arith.constant 3.000000e+00 : f32
    %39 = vector.broadcast %cst_20 : f32 to vector<2x8x128xf32>
    %40 = arith.cmpf oeq, %3, %39 : vector<2x8x128xf32>
    %c0_21 = arith.constant 0 : index
    %c2 = arith.constant 2 : index
    %c0_22 = arith.constant 0 : index
    %c0_23 = arith.constant 0 : index
    %41 = vector.load %arg2[%c0_21, %c2, %c0_22, %c0_23] : memref<2x8x8x128xf32, #tpu.memory_space<vmem>>, vector<2x1x8x128xf32>
    %42 = vector.shape_cast %41 : vector<2x1x8x128xf32> to vector<2x8x128xf32>
    %cst_24 = arith.constant 1.000000e+00 : f32
    %43 = vector.broadcast %cst_24 : f32 to vector<2x8x128xf32>
    %44 = arith.subf %43, %42 : vector<2x8x128xf32>
    %45 = arith.select %40, %42, %44 : vector<2x8x128xi1>, vector<2x8x128xf32>
    %cst_25 = arith.constant 1.000000e+00 : f32
    %46 = vector.broadcast %cst_25 : f32 to vector<2x8x128xf32>
    %47 = arith.subf %46, %45 : vector<2x8x128xf32>
    %48 = arith.mulf %47, %47 : vector<2x8x128xf32>
    %49 = arith.mulf %48, %48 : vector<2x8x128xf32>
    %cst_26 = arith.constant -2.000000e+00 : f32
    %50 = vector.broadcast %cst_26 : f32 to vector<2x8x128xf32>
    %51 = arith.mulf %50, %49 : vector<2x8x128xf32>
    %52 = math.log %45 : vector<2x8x128xf32>
    %53 = arith.mulf %51, %52 : vector<2x8x128xf32>
    %cst_27 = arith.constant dense<0.000000e+00> : vector<8x128xf32>
    %54 = vector.multi_reduction <add>, %53, %cst_27 [0] : vector<2x8x128xf32> to vector<8x128xf32>
    %55 = arith.addf %38, %54 : vector<8x128xf32>
    %c0_28 = arith.constant 0 : index
    %c0_29 = arith.constant 0 : index
    %c0_30 = arith.constant 0 : index
    %56 = vector.load %arg7[%c0_28, %c0_29, %c0_30] : memref<3x8x128xf32, #tpu.memory_space<vmem>>, vector<1x8x128xf32>
    %57 = vector.shape_cast %56 : vector<1x8x128xf32> to vector<8x128xf32>
    %58 = arith.addf %57, %55 : vector<8x128xf32>
    %c0_31 = arith.constant 0 : index
    %c0_32 = arith.constant 0 : index
    %c0_33 = arith.constant 0 : index
    %59 = vector.load %arg7[%c0_31, %c0_32, %c0_33] : memref<3x8x128xf32, #tpu.memory_space<vmem>>, vector<1x8x128xf32>
    %60 = vector.shape_cast %59 : vector<1x8x128xf32> to vector<8x128xf32>
    %61 = vector.shape_cast %58 : vector<8x128xf32> to vector<1x8x128xf32>
    tpu.vector_store %arg7[%c0_31, %c0_32, %c0_33], %61 {strides = array<i32>} : memref<3x8x128xf32, #tpu.memory_space<vmem>>, vector<1x8x128xf32>,
    %c0_34 = arith.constant 0 : index
    %c0_35 = arith.constant 0 : index
    %c0_36 = arith.constant 0 : index
    %c0_37 = arith.constant 0 : index
    %62 = vector.load %arg4[%c0_34, %c0_35, %c0_36, %c0_37] : memref<2x4x8x128xf32, #tpu.memory_space<vmem>>, vector<2x1x8x128xf32>
    %63 = vector.shape_cast %62 : vector<2x1x8x128xf32> to vector<2x8x128xf32>
    %c0_38 = arith.constant 0 : index
    %c1_39 = arith.constant 1 : index
    %c0_40 = arith.constant 0 : index
    %c0_41 = arith.constant 0 : index
    %64 = vector.load %arg4[%c0_38, %c1_39, %c0_40, %c0_41] : memref<2x4x8x128xf32, #tpu.memory_space<vmem>>, vector<2x1x8x128xf32>
    %65 = vector.shape_cast %64 : vector<2x1x8x128xf32> to vector<2x8x128xf32>
    %c0_42 = arith.constant 0 : index
    %c2_43 = arith.constant 2 : index
    %c0_44 = arith.constant 0 : index
    %c0_45 = arith.constant 0 : index
    %66 = vector.load %arg4[%c0_42, %c2_43, %c0_44, %c0_45] : memref<2x4x8x128xf32, #tpu.memory_space<vmem>>, vector<2x1x8x128xf32>
    %67 = vector.shape_cast %66 : vector<2x1x8x128xf32> to vector<2x8x128xf32>
    %c0_46 = arith.constant 0 : index
    %c3 = arith.constant 3 : index
    %c0_47 = arith.constant 0 : index
    %c0_48 = arith.constant 0 : index
    %68 = vector.load %arg4[%c0_46, %c3, %c0_47, %c0_48] : memref<2x4x8x128xf32, #tpu.memory_space<vmem>>, vector<2x1x8x128xf32>
    %69 = vector.shape_cast %68 : vector<2x1x8x128xf32> to vector<2x8x128xf32>
    %c0_49 = arith.constant 0 : index
    %c3_50 = arith.constant 3 : index
    %c0_51 = arith.constant 0 : index
    %c0_52 = arith.constant 0 : index
    %70 = vector.load %arg2[%c0_49, %c3_50, %c0_51, %c0_52] : memref<2x8x8x128xf32, #tpu.memory_space<vmem>>, vector<2x1x8x128xf32>
    %71 = vector.shape_cast %70 : vector<2x1x8x128xf32> to vector<2x8x128xf32>
    %c0_53 = arith.constant 0 : index
    %c4 = arith.constant 4 : index
    %c0_54 = arith.constant 0 : index
    %c0_55 = arith.constant 0 : index
    %72 = vector.load %arg2[%c0_53, %c4, %c0_54, %c0_55] : memref<2x8x8x128xf32, #tpu.memory_space<vmem>>, vector<2x1x8x128xf32>
    %73 = vector.shape_cast %72 : vector<2x1x8x128xf32> to vector<2x8x128xf32>
    %c0_56 = arith.constant 0 : index
    %c5 = arith.constant 5 : index
    %c0_57 = arith.constant 0 : index
    %c0_58 = arith.constant 0 : index
    %74 = vector.load %arg2[%c0_56, %c5, %c0_57, %c0_58] : memref<2x8x8x128xf32, #tpu.memory_space<vmem>>, vector<2x1x8x128xf32>
    %75 = vector.shape_cast %74 : vector<2x1x8x128xf32> to vector<2x8x128xf32>
    %c0_59 = arith.constant 0 : index
    %c6 = arith.constant 6 : index
    %c0_60 = arith.constant 0 : index
    %c0_61 = arith.constant 0 : index
    %76 = vector.load %arg2[%c0_59, %c6, %c0_60, %c0_61] : memref<2x8x8x128xf32, #tpu.memory_space<vmem>>, vector<2x1x8x128xf32>
    %77 = vector.shape_cast %76 : vector<2x1x8x128xf32> to vector<2x8x128xf32>
    %78 = arith.addf %63, %67 : vector<2x8x128xf32>
    %79 = arith.addf %65, %69 : vector<2x8x128xf32>
    %80 = arith.mulf %78, %79 : vector<2x8x128xf32>
    %81 = arith.addf %71, %75 : vector<2x8x128xf32>
    %82 = arith.addf %73, %77 : vector<2x8x128xf32>
    %83 = arith.mulf %81, %82 : vector<2x8x128xf32>
    %84 = arith.minimumf %67, %75 : vector<2x8x128xf32>
    %85 = arith.minimumf %63, %71 : vector<2x8x128xf32>
    %86 = arith.addf %84, %85 : vector<2x8x128xf32>
    %87 = arith.minimumf %65, %73 : vector<2x8x128xf32>
    %88 = arith.minimumf %69, %77 : vector<2x8x128xf32>
    %89 = arith.addf %87, %88 : vector<2x8x128xf32>
    %90 = arith.mulf %86, %89 : vector<2x8x128xf32>
    %91 = arith.addf %80, %83 : vector<2x8x128xf32>
    %92 = arith.subf %91, %90 : vector<2x8x128xf32>
    %cst_62 = arith.constant 1.000000e+00 : f32
    %93 = vector.broadcast %cst_62 : f32 to vector<2x8x128xf32>
    %94 = arith.addf %90, %93 : vector<2x8x128xf32>
    %cst_63 = arith.constant 1.000000e+00 : f32
    %95 = vector.broadcast %cst_63 : f32 to vector<2x8x128xf32>
    %96 = arith.addf %92, %95 : vector<2x8x128xf32>
    %97 = arith.divf %94, %96 : vector<2x8x128xf32>
    %98 = math.log %97 : vector<2x8x128xf32>
    %cst_64 = arith.constant 0.000000e+00 : f32
    %99 = vector.broadcast %cst_64 : f32 to vector<2x8x128xf32>
    %100 = arith.subf %99, %98 : vector<2x8x128xf32>
    %cst_65 = arith.constant 0.000000e+00 : f32
    %101 = vector.broadcast %cst_65 : f32 to vector<2x8x128xf32>
    %102 = arith.cmpf ogt, %3, %101 : vector<2x8x128xf32>
    %103 = arith.extui %102 : vector<2x8x128xi1> to vector<2x8x128xi32>
    %104 = arith.sitofp %103 : vector<2x8x128xi32> to vector<2x8x128xf32>
    %c1_66 = arith.constant 1 : index
    %c0_67 = arith.constant 0 : index
    %c0_68 = arith.constant 0 : index
    %105 = vector.load %arg7[%c1_66, %c0_67, %c0_68] : memref<3x8x128xf32, #tpu.memory_space<vmem>>, vector<1x8x128xf32>
    %106 = vector.shape_cast %105 : vector<1x8x128xf32> to vector<8x128xf32>
    %cst_69 = arith.constant dense<0.000000e+00> : vector<8x128xf32>
    %107 = vector.multi_reduction <add>, %100, %cst_69 [0] : vector<2x8x128xf32> to vector<8x128xf32>
    %cst_70 = arith.constant dense<0.000000e+00> : vector<8x128xf32>
    %108 = vector.multi_reduction <add>, %104, %cst_70 [0] : vector<2x8x128xf32> to vector<8x128xf32>
    %109 = arith.mulf %107, %108 : vector<8x128xf32>
    %110 = arith.addf %106, %109 : vector<8x128xf32>
    %c1_71 = arith.constant 1 : index
    %c0_72 = arith.constant 0 : index
    %c0_73 = arith.constant 0 : index
    %111 = vector.load %arg7[%c1_71, %c0_72, %c0_73] : memref<3x8x128xf32, #tpu.memory_space<vmem>>, vector<1x8x128xf32>
    %112 = vector.shape_cast %111 : vector<1x8x128xf32> to vector<8x128xf32>
    %113 = vector.shape_cast %110 : vector<8x128xf32> to vector<1x8x128xf32>
    tpu.vector_store %arg7[%c1_71, %c0_72, %c0_73], %113 {strides = array<i32>} : memref<3x8x128xf32, #tpu.memory_space<vmem>>, vector<1x8x128xf32>,
    %c0_74 = arith.constant 0 : index
    %c7 = arith.constant 7 : index
    %c0_75 = arith.constant 0 : index
    %c0_76 = arith.constant 0 : index
    %114 = vector.load %arg2[%c0_74, %c7, %c0_75, %c0_76] : memref<2x8x8x128xf32, #tpu.memory_space<vmem>>, vector<2x1x8x128xf32>
    %115 = vector.shape_cast %114 : vector<2x1x8x128xf32> to vector<2x8x128xf32>
    %c0_77 = arith.constant 0 : index
    %c0_78 = arith.constant 0 : index
    %c0_79 = arith.constant 0 : index
    %116 = vector.load %arg5[%c0_77, %c0_78, %c0_79] : memref<2x8x128xf32, #tpu.memory_space<vmem>>, vector<2x8x128xf32>
    %cst_80 = arith.constant 0.000000e+00 : f32
    %117 = vector.broadcast %cst_80 : f32 to vector<2x8x128xf32>
    %118 = arith.maximumf %115, %117 : vector<2x8x128xf32>
    %119 = arith.mulf %115, %116 : vector<2x8x128xf32>
    %120 = arith.subf %118, %119 : vector<2x8x128xf32>
    %121 = math.absf %115 : vector<2x8x128xf32>
    %cst_81 = arith.constant 0.000000e+00 : f32
    %122 = vector.broadcast %cst_81 : f32 to vector<2x8x128xf32>
    %123 = arith.subf %122, %121 : vector<2x8x128xf32>
    %124 = math.exp %123 : vector<2x8x128xf32>
    %cst_82 = arith.constant 1.000000e+00 : f32
    %125 = vector.broadcast %cst_82 : f32 to vector<2x8x128xf32>
    %126 = arith.addf %125, %124 : vector<2x8x128xf32>
    %127 = math.log %126 : vector<2x8x128xf32>
    %128 = arith.addf %120, %127 : vector<2x8x128xf32>
    %c1_i32 = arith.constant 1 : i32
    %129 = arith.muli %arg0, %c1_i32 : i32
    %130 = arith.addi %129, %arg1 : i32
    %c8_i32 = arith.constant 8 : i32
    %131 = arith.muli %130, %c8_i32 : i32
    %132 = tpu.iota {dimensions = array<i32: 0>} : vector<8x128xi32>
    %133 = tpu.iota {dimensions = array<i32: 1>} : vector<8x128xi32>
    %134 = vector.broadcast %131 : i32 to vector<8x128xi32>
    %135 = arith.addi %134, %132 : vector<8x128xi32>
    %c128_i32 = arith.constant 128 : i32
    %136 = vector.broadcast %c128_i32 : i32 to vector<8x128xi32>
    %137 = arith.muli %135, %136 : vector<8x128xi32>
    %138 = arith.addi %137, %133 : vector<8x128xi32>
    %c256_i32 = arith.constant 256 : i32
    %139 = vector.broadcast %c256_i32 : i32 to vector<8x128xi32>
    %140 = arith.cmpi slt, %138, %139 : vector<8x128xi32>
    %141 = vector.shape_cast %140 : vector<8x128xi1> to vector<1x8x128xi1>
    %cst_83 = arith.constant 0.000000e+00 : f32
    %142 = vector.shape_cast %141 : vector<1x8x128xi1> to vector<1x8x128xi1>
    %143 = vector.broadcast %142 : vector<1x8x128xi1> to vector<2x8x128xi1>
    %144 = vector.broadcast %cst_83 : f32 to vector<2x8x128xf32>
    %145 = arith.select %143, %128, %144 : vector<2x8x128xi1>, vector<2x8x128xf32>
    %c2_84 = arith.constant 2 : index
    %c0_85 = arith.constant 0 : index
    %c0_86 = arith.constant 0 : index
    %146 = vector.load %arg7[%c2_84, %c0_85, %c0_86] : memref<3x8x128xf32, #tpu.memory_space<vmem>>, vector<1x8x128xf32>
    %147 = vector.shape_cast %146 : vector<1x8x128xf32> to vector<8x128xf32>
    %cst_87 = arith.constant dense<0.000000e+00> : vector<8x128xf32>
    %148 = vector.multi_reduction <add>, %145, %cst_87 [0] : vector<2x8x128xf32> to vector<8x128xf32>
    %149 = arith.addf %147, %148 : vector<8x128xf32>
    %c2_88 = arith.constant 2 : index
    %c0_89 = arith.constant 0 : index
    %c0_90 = arith.constant 0 : index
    %150 = vector.load %arg7[%c2_88, %c0_89, %c0_90] : memref<3x8x128xf32, #tpu.memory_space<vmem>>, vector<1x8x128xf32>
    %151 = vector.shape_cast %150 : vector<1x8x128xf32> to vector<8x128xf32>
    %152 = vector.shape_cast %149 : vector<8x128xf32> to vector<1x8x128xf32>
    tpu.vector_store %arg7[%c2_88, %c0_89, %c0_90], %152 {strides = array<i32>} : memref<3x8x128xf32, #tpu.memory_space<vmem>>, vector<1x8x128xf32>,
    %c0_i32_91 = arith.constant 0 : i32
    %153 = arith.cmpi eq, %arg1, %c0_i32_91 : i32
    %154 = arith.extui %153 : i1 to i32
    %c0_i32_92 = arith.constant 0 : i32
    %155 = arith.cmpi ne, %154, %c0_i32_92 : i32
    scf.if %155 {
      %c0_93 = arith.constant 0 : index
      %c0_94 = arith.constant 0 : index
      %c0_95 = arith.constant 0 : index
      %156 = vector.load %arg7[%c0_93, %c0_94, %c0_95] : memref<3x8x128xf32, #tpu.memory_space<vmem>>, vector<1x8x128xf32>
      %157 = vector.shape_cast %156 : vector<1x8x128xf32> to vector<8x128xf32>
      %cst_96 = arith.constant dense<0.000000e+00> : vector<128xf32>
      %158 = vector.multi_reduction <add>, %157, %cst_96 [0] : vector<8x128xf32> to vector<128xf32>
      %159 = vector.shape_cast %158 : vector<128xf32> to vector<1x128xf32>
      %c1_97 = arith.constant 1 : index
      %c0_98 = arith.constant 0 : index
      %c0_99 = arith.constant 0 : index
      %160 = vector.load %arg7[%c1_97, %c0_98, %c0_99] : memref<3x8x128xf32, #tpu.memory_space<vmem>>, vector<1x8x128xf32>
      %161 = vector.shape_cast %160 : vector<1x8x128xf32> to vector<8x128xf32>
      %cst_100 = arith.constant dense<0.000000e+00> : vector<128xf32>
      %162 = vector.multi_reduction <add>, %161, %cst_100 [0] : vector<8x128xf32> to vector<128xf32>
      %163 = vector.shape_cast %162 : vector<128xf32> to vector<1x128xf32>
      %c2_101 = arith.constant 2 : index
      %c0_102 = arith.constant 0 : index
      %c0_103 = arith.constant 0 : index
      %164 = vector.load %arg7[%c2_101, %c0_102, %c0_103] : memref<3x8x128xf32, #tpu.memory_space<vmem>>, vector<1x8x128xf32>
      %165 = vector.shape_cast %164 : vector<1x8x128xf32> to vector<8x128xf32>
      %cst_104 = arith.constant dense<0.000000e+00> : vector<128xf32>
      %166 = vector.multi_reduction <add>, %165, %cst_104 [0] : vector<8x128xf32> to vector<128xf32>
      %167 = vector.shape_cast %166 : vector<128xf32> to vector<1x128xf32>
      %168 = tpu.concatenate %159, %163, %167 in 0 : vector<1x128xf32>, vector<1x128xf32>, vector<1x128xf32> -> vector<3x128xf32>
      %169 = vector.shape_cast %168 : vector<3x128xf32> to vector<1x3x128xf32>
      %c0_105 = arith.constant 0 : index
      %c0_106 = arith.constant 0 : index
      %c0_107 = arith.constant 0 : index
      %170 = vector.load %arg6[%c0_105, %c0_106, %c0_107] : memref<1x3x128xf32, #tpu.memory_space<vmem>>, vector<1x3x128xf32>
      tpu.vector_store %arg6[%c0_105, %c0_106, %c0_107], %169 {strides = array<i32>} : memref<1x3x128xf32, #tpu.memory_space<vmem>>, vector<1x3x128xf32>,
    } else {
    }
    return
  }
  func.func @transform_0(%arg0: i32, %arg1: i32) -> (i32, i32, i32, i32) {
    %c1_i32 = arith.constant 1 : i32
    %0 = arith.muli %arg0, %c1_i32 : i32
    %1 = arith.addi %0, %arg1 : i32
    %c0_i32 = arith.constant 0 : i32
    %c0_i32_0 = arith.constant 0 : i32
    %c0_i32_1 = arith.constant 0 : i32
    %c0_i32_2 = arith.constant 0 : i32
    return %c0_i32, %c0_i32_0, %1, %c0_i32_1 : i32, i32, i32, i32
  }
  func.func @transform_1(%arg0: i32, %arg1: i32) -> (i32, i32, i32) {
    %c1_i32 = arith.constant 1 : i32
    %0 = arith.muli %arg0, %c1_i32 : i32
    %1 = arith.addi %0, %arg1 : i32
    %c0_i32 = arith.constant 0 : i32
    %c0_i32_0 = arith.constant 0 : i32
    %c0_i32_1 = arith.constant 0 : i32
    return %c0_i32, %1, %c0_i32_0 : i32, i32, i32
  }
  func.func @transform_2(%arg0: i32, %arg1: i32) -> (i32, i32, i32, i32) {
    %c1_i32 = arith.constant 1 : i32
    %0 = arith.muli %arg0, %c1_i32 : i32
    %1 = arith.addi %0, %arg1 : i32
    %c0_i32 = arith.constant 0 : i32
    %c0_i32_0 = arith.constant 0 : i32
    %c0_i32_1 = arith.constant 0 : i32
    %c0_i32_2 = arith.constant 0 : i32
    return %c0_i32, %c0_i32_0, %1, %c0_i32_1 : i32, i32, i32, i32
  }
  func.func @transform_3(%arg0: i32, %arg1: i32) -> (i32, i32, i32) {
    %c1_i32 = arith.constant 1 : i32
    %0 = arith.muli %arg0, %c1_i32 : i32
    %1 = arith.addi %0, %arg1 : i32
    %c0_i32 = arith.constant 0 : i32
    %c0_i32_0 = arith.constant 0 : i32
    %c0_i32_1 = arith.constant 0 : i32
    return %c0_i32, %1, %c0_i32_0 : i32, i32, i32
  }
  func.func @transform_4(%arg0: i32, %arg1: i32) -> (i32, i32, i32) {
    %c0_i32 = arith.constant 0 : i32
    %c0_i32_0 = arith.constant 0 : i32
    %c0_i32_1 = arith.constant 0 : i32
    return %arg0, %c0_i32, %c0_i32_0 : i32, i32, i32
  }
}

</mosaic_0001>

<bundles_post_ra>
// kernel: tpu_custom_call.1
= control target key start
LH: loop header
LB: loop body
LE: loop exit
PB: predicated region body
PF: predicated region fallthrough
CT: control target
= control target key end

     0   :  { %s1430_s0 = inlined_call_operand.hbm [shape: f32[2,8,16,128], index: 0, kind: input, shape index: {}]   ;;  %s1431_s1 = inlined_call_operand.hbm [shape: f32[2,16,128], index: 1, kind: input, shape index: {}]   ;;  %s1432_s2 = inlined_call_operand.hbm [shape: f32[2,4,16,128], index: 2, kind: input, shape index: {}]   ;;  %s1433_s3 = inlined_call_operand.hbm [shape: f32[2,16,128], index: 3, kind: input, shape index: {}]   ;;  %s1434_s4 = inlined_call_operand.vmem [shape: f32[2,3,128], index: 4, kind: output, shape index: {}]  }
   0x1   :  { %1446 = sst [smem:[#allocation15_spill]] %s1430_s0 }
   0x2   :  { %1447 = sst [smem:[#allocation16_spill]] %s1431_s1 }
   0x3   :  { %9 = vsyncpa [#allocation4], 0 }
   0x4   :  { %11 = vsyncpa [#allocation4 + $0x1], 0 }
   0x5   :  { %12 = vsyncpa [#allocation6], 0 }
   0x6   :  { %14 = vsyncpa [#allocation6 + $0x1], 0 }
   0x7   :  { %15 = vsyncpa [#allocation9], 0 }
   0x8   :  { %17 = vsyncpa [#allocation9 + $0x1], 0  ;;  %s1100_s15 = smov 0   ;;  %s1102_s16 = smov 0  }
   0x9   :  { %s1104_s17 = smov 0   ;;  %s1106_s18 = smov 0  }
   0xa   :  { %s1108_s19 = smov 0   ;;  %s1110_s20 = smov 0  }
   0xb LB: > { %1448 = sst [smem:[#allocation13_spill]] %s1061_s19  ;;  %s1436_s21 = sadd.s32 4294967295, %s1065_s20   ;;  %s1065_s20 = sphi %s1110_s20, %s23_s20   ;;  %s1061_s19 = sphi %s1108_s19, %s1467_s19   ;;  %s1057_s18 = sphi %s1106_s18, %s1466_s18   ;;  %s1053_s17 = sphi %s1104_s17, %s1470_s17   ;;  %s1049_s16 = sphi %s1102_s16, %s1469_s16   ;;  %s1045_s15 = sphi %s1100_s15, %s1468_s15  }
   0xc   : > { %s35_s22 = sadd.s32 1, %s1061_s19  ;;  %s44_s23 = sadd.s32 1, %s1053_s17 }
   0xd   : > { %p37_p0 = scmp.ge.s32.totalorder %s35_s22, 2  ;;  %p51_p1 = scmp.ne.s32.totalorder %s1053_s17, %s1049_s16 }
   0xe   : > { %p52_p2 = scmp.eq.s32.totalorder %s1065_s20, 0  ;;  %p57_p4 = scmp.ne.s32.totalorder %s1049_s16, %s1045_s15 }
   0xf   : > { %s1472_s22 = smov (%p37_p0, %s35_s22), 0  ;;  %p58_p5 = scmp.eq.s32.totalorder %s1436_s21, 0 }
  0x10   : > { %1449 = sst [smem:[#allocation14_spill]] %s1472_s22  ;;  %p53_p3 = por %p52_p2, %p51_p1 }
  0x11   : > { %s41_s24 = ssub.s32 %s1061_s19, %s1472_s22  ;;  %p1141_p7 = por %p58_p5, %p57_p4 }
  0x12   : > { %p42_p6 = scmp.eq.s32.totalorder %s41_s24, 0  ;;  %p806_p8 = scmp.lt.s32.totalorder %s1065_s20, 2 }
  0x13   : > { %s1450_s25 = scalar_select %p1141_p7, 1, 0 }
  0x14   : > { %s1147_s26 = scalar_select %p42_p6, %s1053_s17, %s44_s23  }
  0x15   : > { %s1150_s27 = sand.u32 1, %s1053_s17   ;;  %s1153_s28 = sshll.u32 %s1061_s19, 7 }
  0x16   : > { %p1155_p9 = pnand %p806_p8, %p53_p3  ;;  %s212_s30 = sand.u32 1, %s1065_s20  }
  0x17   : > { %s1437_s5 = sshll.u32 %s1150_s27, 4  ;;  %s1452_s1 = sld [smem:[#allocation16_spill]] }
  0x18   : > { %s216_s9 = scalar_lea.vmem [#allocation5], %s1437_s5  ;;  %s1173_s11 = scalar_lea.sflag [#allocation6], %s212_s30 }
  0x19   : > { %s223_s10 = sshll.u32 %s216_s9, 4  ;;  %p1179_p13 = pneg %p1155_p9  ;;  %s1170_s10 = int_to_ptr.vmem [resolvable:$true] %s223_s10 }
  0x1d   : > { %s1165_s8 = scalar_lea.hbm %s1452_s1, %s1153_s28  ;;  %s892_s23 = scalar_lea.hbm %s1452_s1, 512 }
  0x1e   : > { %s887_s12 = scalar_lea.hbm %s1165_s8, 256  ;;  %p893_p2 = scmp.lt.u32.totalorder %s1165_s8, %s1452_s1 }
  0x1f   : > { %p888_p12 = scmp.ne.s32.totalorder %s1165_s8, %s887_s12  ;;  %p894_p3 = scmp.lt.u32.totalorder %s892_s23, %s887_s12 }
  0x20   : > { %p896_p5 = scmp.lt.u32.totalorder %s887_s12, %s1165_s8 }
  0x21   : > { %p890_p0 = pnand %p1179_p13, %p888_p12  ;;  %p895_p4 = por %p894_p3, %p893_p2 }
  0x23   : > { %p891_p1 = pneg %p890_p0  ;;  %p897_p6 = por %p896_p5, %p895_p4 }
  0x25   : > { %p898_p8 = pnand %p897_p6, %p891_p1 }
  0x27   : > { %901 = shalt.err (!%p898_p8)
}
  0x28   : > { %s902_s30 = scalar_lea.vmem %s1170_s10, 256  ;;  %s1067_s7 = smov [#allocation5]  }
  0x29   : > { %p903_p12 = scmp.ne.s32.totalorder %s1170_s10, %s902_s30  ;;  %s907_s9 = sshll.u32 %s1067_s7, 4  ;;  %s908_s9 = int_to_ptr.vmem [resolvable:$false] %s907_s9 }
  0x2a   : > { %s909_s14 = scalar_lea.vmem %s908_s9, 512  ;;  %p910_p11 = scmp.lt.s32.totalorder %s1170_s10, %s908_s9 }
  0x2b   : > { %p905_p0 = pnand %p903_p12, %p1179_p13  ;;  %p911_p7 = scmp.lt.s32.totalorder %s909_s14, %s902_s30 }
  0x2d   : > { %p906_p10 = pneg %p905_p0  ;;  %p912_p2 = por %p911_p7, %p910_p11 }
  0x2f   : > { %p913_p3 = pnand %p912_p2, %p906_p10 }
  0x31   : > { %916 = shalt.err (!%p913_p3)
}
  0x32   : > { %s1438_s12 = smov 256   ;;  %s1440_s15 = smov 128  }
  0x33   : > { %s1442_s23 = smov 8   ;;  %p1454_p7 = scmp.lt.s32.totalorder %s1065_s20, 3 }
  0x34   : > { %799 = dma.hbm_to_vmem [thread:$0]  (!%p1155_p9), %s1165_s8, 256, %s1170_s10, %s1173_s11, %s1438_s12, %s1440_s15, %s1442_s23  }
  0x35   : > { %p1455_p10 = scmp.ge.s32.totalorder %s1065_s20, 1  ;;  %s746_s6 = sshll.u32 %s1150_s27, 7 }
  0x36   : > { %s1457_s0 = sld [smem:[#allocation15_spill]]  ;;  %s195_s21 = scalar_lea.vmem [#allocation3], %s746_s6 }
  0x37   : > { %p1210_p11 = pnand %p1455_p10, %p1454_p7  ;;  %s202_s5 = sshll.u32 %s195_s21, 4  ;;  %s1222_s5 = int_to_ptr.vmem [resolvable:$true] %s202_s5 }
  0x38   : > { %s1228_s12 = scalar_lea.hbm %s1432_s2, %s1153_s28  ;;  %s192_s15 = scalar_lea.sflag [#allocation4], %s1150_s27 }
  0x39   : > { %s1456_s24 = scalar_select %p1210_p11, 1, 0 }
  0x3c   : > { %s1219_s9 = scalar_lea.hbm %s1457_s0, %s1153_s28  ;;  %s922_s1 = scalar_lea.hbm %s1457_s0, 4096 }
  0x3d   : > { %s917_s23 = scalar_lea.hbm %s1219_s9, 2048  ;;  %p923_p6 = scmp.lt.u32.totalorder %s1219_s9, %s1457_s0 }
  0x3e   : > { %p918_p1 = scmp.ne.s32.totalorder %s1219_s9, %s917_s23  ;;  %p924_p8 = scmp.lt.u32.totalorder %s922_s1, %s917_s23 }
  0x3f   : > { %p926_p0 = scmp.lt.u32.totalorder %s917_s23, %s1219_s9 }
  0x40   : > { %p920_p4 = pnand %p918_p1, %p1179_p13  ;;  %p925_p12 = por %p924_p8, %p923_p6 }
  0x42   : > { %p921_p5 = pneg %p920_p4  ;;  %p927_p2 = por %p926_p0, %p925_p12 }
  0x44   : > { %p928_p3 = pnand %p927_p2, %p921_p5 }
  0x46   : > { %931 = shalt.err (!%p928_p3)
}
  0x47   : > { %s932_s21 = scalar_lea.vmem %s1222_s5, 2048  ;;  %s1071_s8 = smov [#allocation3]  }
  0x48   : > { %p933_p7 = scmp.ne.s32.totalorder %s1222_s5, %s932_s21  ;;  %s937_s10 = sshll.u32 %s1071_s8, 4  ;;  %s938_s10 = int_to_ptr.vmem [resolvable:$false] %s937_s10 }
  0x49   : > { %s939_s14 = scalar_lea.vmem %s938_s10, 4096  ;;  %p940_p4 = scmp.lt.s32.totalorder %s1222_s5, %s938_s10 }
  0x4a   : > { %p935_p10 = pnand %p933_p7, %p1179_p13  ;;  %p941_p11 = scmp.lt.s32.totalorder %s939_s14, %s932_s21 }
  0x4c   : > { %p936_p1 = pneg %p935_p10  ;;  %p942_p6 = por %p941_p11, %p940_p4 }
  0x4e   : > { %p943_p8 = pnand %p942_p6, %p936_p1 }
  0x50   : > { %946 = shalt.err (!%p943_p8)
}
  0x51   : > { %s1458_s1 = smov 8   ;;  %s1459_s23 = smov 128  }
  0x52   : > { %s1460_s30 = smov 256   ;;  %s1461_s7 = sshll.u32 %s1150_s27, 6 }
  0x53   : > { %796 = dma.hbm_to_vmem [thread:$0]  (!%p1155_p9), %s1219_s9, 2048, %s1222_s5, %s192_s15, %s1460_s30, %s1459_s23, %s1458_s1  }
  0x54   : > { %s237_s6 = scalar_lea.vmem [#allocation7], %s1461_s7  ;;  %s947_s8 = scalar_lea.hbm %s1228_s12, 1024 }
  0x55   : > { %s244_s21 = sshll.u32 %s237_s6, 4  ;;  %p948_p11 = scmp.ne.s32.totalorder %s1228_s12, %s947_s8  ;;  %s1259_s21 = int_to_ptr.vmem [resolvable:$true] %s244_s21 }
  0x56   : > { %s952_s0 = scalar_lea.hbm %s1432_s2, 2048  ;;  %p953_p0 = scmp.lt.u32.totalorder %s1228_s12, %s1432_s2 }
  0x57   : > { %p950_p5 = pnand %p948_p11, %p1179_p13  ;;  %p954_p2 = scmp.lt.u32.totalorder %s952_s0, %s947_s8 }
  0x58   : > { %p956_p7 = scmp.lt.u32.totalorder %s947_s8, %s1228_s12 }
  0x59   : > { %p951_p12 = pneg %p950_p5  ;;  %p955_p3 = por %p954_p2, %p953_p0 }
  0x5b   : > { %p957_p10 = por %p956_p7, %p955_p3 }
  0x5d   : > { %p958_p1 = pnand %p957_p10, %p951_p12 }
  0x5f   : > { %961 = shalt.err (!%p958_p1)
}
  0x60   : > { %s962_s5 = scalar_lea.vmem %s1259_s21, 1024  ;;  %s1072_s15 = smov [#allocation7]  }
  0x61   : > { %p963_p4 = scmp.ne.s32.totalorder %s1259_s21, %s962_s5  ;;  %s967_s9 = sshll.u32 %s1072_s15, 4  ;;  %s968_s9 = int_to_ptr.vmem [resolvable:$false] %s967_s9 }
  0x62   : > { %s969_s19 = scalar_lea.vmem %s968_s9, 2048  ;;  %p970_p11 = scmp.lt.s32.totalorder %s1259_s21, %s968_s9 }
  0x63   : > { %p965_p6 = pnand %p963_p4, %p1179_p13  ;;  %p971_p5 = scmp.lt.s32.totalorder %s969_s19, %s962_s5 }
  0x65   : > { %p966_p8 = pneg %p965_p6  ;;  %p972_p0 = por %p971_p5, %p970_p11 }
  0x67   : > { %p973_p2 = pnand %p972_p0, %p966_p8 }
  0x69   : > { %976 = shalt.err (!%p973_p2)
}
  0x6a   : > { %802 = dma.hbm_to_vmem [thread:$0]  (!%p1155_p9), %s1228_s12, 1024, %s1259_s21, %s1173_s11, %s1460_s30, %s1459_s23, %s1458_s1  }
  0x6b   : > { %s1290_s7 = scalar_lea.hbm %s1433_s3, %s1153_s28  ;;  %s1462_s6 = sshll.u32 %s1150_s27, 4 }
  0x6c   : > { %s258_s8 = scalar_lea.vmem [#allocation8], %s1462_s6  ;;  %s255_s14 = scalar_lea.sflag [#allocation9], %s1150_s27 }
  0x6d   : > { %s265_s10 = sshll.u32 %s258_s8, 4  ;;  %s977_s5 = scalar_lea.hbm %s1290_s7, 256  ;;  %s1294_s10 = int_to_ptr.vmem [resolvable:$true] %s265_s10 }
  0x6e   : > { %p978_p12 = scmp.ne.s32.totalorder %s1290_s7, %s977_s5  ;;  %s982_s28 = scalar_lea.hbm %s1433_s3, 512 }
  0x6f   : > { %p983_p10 = scmp.lt.u32.totalorder %s1290_s7, %s1433_s3  ;;  %p984_p1 = scmp.lt.u32.totalorder %s982_s28, %s977_s5 }
  0x70   : > { %p980_p3 = pnand %p978_p12, %p1179_p13  ;;  %p986_p6 = scmp.lt.u32.totalorder %s977_s5, %s1290_s7 }
  0x71   : > { %p985_p4 = por %p984_p1, %p983_p10 }
  0x72   : > { %p981_p7 = pneg %p980_p3 }
  0x73   : > { %p987_p8 = por %p986_p6, %p985_p4 }
  0x75   : > { %p988_p11 = pnand %p987_p8, %p981_p7 }
  0x77   : > { %991 = shalt.err (!%p988_p11)
}
  0x78   : > { %s992_s9 = scalar_lea.vmem %s1294_s10, 256  ;;  %s1073_s19 = smov [#allocation8]  }
  0x79   : > { %p993_p5 = scmp.ne.s32.totalorder %s1294_s10, %s992_s9  ;;  %s997_s0 = sshll.u32 %s1073_s19, 4  ;;  %s998_s0 = int_to_ptr.vmem [resolvable:$false] %s997_s0 }
  0x7a   : > { %s999_s22 = scalar_lea.vmem %s998_s0, 512  ;;  %p1000_p12 = scmp.lt.s32.totalorder %s1294_s10, %s998_s0 }
  0x7b   : > { %p995_p0 = pnand %p993_p5, %p1179_p13  ;;  %p1001_p3 = scmp.lt.s32.totalorder %s999_s22, %s992_s9 }
  0x7d   : > { %p996_p2 = pneg %p995_p0  ;;  %p1002_p10 = por %p1001_p3, %p1000_p12 }
  0x7f   : > { %p1003_p1 = pnand %p1002_p10, %p996_p2 }
  0x81   : > { %1006 = shalt.err (!%p1003_p1)
}
  0x82   : > { %805 = dma.hbm_to_vmem [thread:$0]  (!%p1155_p9), %s1290_s7, 256, %s1294_s10, %s255_s14, %s1460_s30, %s1459_s23, %s1458_s1  }
  0x83   : > { %p1463_p13 = scmp.ne.s32.totalorder %s1456_s24, 0 }
  0x84   : > { %s279_s13 = sand.u32 (!%p1463_p13), 1, %s1049_s16   ;;  %p1464_p7 = scmp.ne.s32.totalorder (!%p1463_p13), %s1450_s25, 0 }
  0x85   : > { %277 = sbr.rel (%p1463_p13) target bundleno = 219 (0xdb), region = 36  ;;  %s755_s6 = sshll.u32 (!%p1463_p13), %s279_s13, 7 }
  0x86   : > { %s280_s8 = scalar_lea.sflag (!%p1463_p13), [#allocation4], %s279_s13  ;;  %s1326_s5 = scalar_lea.vmem (!%p1463_p13), [#allocation3], %s755_s6 }
  0x8c   : > { %1032 = dma.done.wait (%p1464_p7), %s280_s8, 2048  }
  0x8d   : > { %1034 = vsyncadd (%p1464_p7), %s280_s8, 4294965248  ;;  %s1465_s27 = sadd.s32 4294967295, %s1065_s20   ;;  %s756_s1 = sshll.u32 %s279_s13, 4 }
  0x8e   : > { %s288_s29 = sand.u32 1, %s1465_s27   ;;  %s292_s24 = scalar_lea.vmem [#allocation5], %s756_s1 }
  0x8f   : > { %s289_s23 = scalar_lea.sflag [#allocation6], %s288_s29 }
  0x90   : > { %1036 = dma.done.wait (%p1464_p7), %s289_s23, 1280  }
  0x91   : > { %1038 = vsyncadd (%p1464_p7), %s289_s23, 4294966016  ;;  %s757_s30 = sshll.u32 %s279_s13, 6  ;;  %s307_s10 = scalar_lea.sflag [#allocation9], %s279_s13 }
  0x92   : > { %s1338_s7 = scalar_lea.vmem [#allocation7], %s757_s30  ;;  %s1340_s14 = scalar_lea.vmem [#allocation8], %s756_s1 }
  0x93   : > { %1040 = dma.done.wait (%p1464_p7), %s307_s10, 256  }
  0x94   : > { %1042 = vsyncadd (%p1464_p7), %s307_s10, 4294967040  ;;  %v368_v0 = vld [vmem:[%s1326_s5] sm:$0xff]  ;;  %v1350_v3 = vld [vmem:[%s292_s24 + $0x8] sm:$0xff]  ;;  %s782_s25 = sshll.u32 %s1057_s18, 3  ;;  %p353_p9 = scmp.lt.s32.totalorder %s1057_s18, 1  ;;  %vm594_vm9 = vcmask 1040384  }
  0x95   : > { %v1347_v1 = vld [vmem:[%s292_s24] sm:$0xff]  ;;  %v370_v4 = vsub.f32 1.0, %v368_v0  ;;  %v760_v6 = vld [vmem:[%s1326_s5 + $0x8] sm:$0xff]  ;;  %vm367_vm1 = vcmp.eq.f32.partialorder %v1350_v3, 1.0  ;;  %v768_v20 = vld [vmem:[%s1338_s7 + $0x18] sm:$0xff]  ;;  %vm391_vm3 = vcmp.eq.f32.partialorder %v1350_v3, 2.0 }
  0x96   : > { %v369_v2 = vld [vmem:[%s1326_s5 + $0x40] sm:$0xff]  ;;  %vm366_vm0 = vcmp.eq.f32.partialorder %v1347_v1, 1.0  ;;  %v761_v7 = vld [vmem:[%s1326_s5 + $0x48] sm:$0xff]  ;;  %v395_v9 = vsub.f32 1.0, %v760_v6  ;;  %v762_v10 = vld [vmem:[%s1326_s5 + $0x10] sm:$0xff]  ;;  %vm390_vm2 = vcmp.eq.f32.partialorder %v1347_v1, 2.0 }
  0x97   : > { %v371_v5 = vsub.f32 1.0, %v369_v2  ;;  %v372_v8 = vsel %vm366_vm0, %v368_v0, %v370_v4  ;;  %v763_v11 = vld [vmem:[%s1326_s5 + $0x50] sm:$0xff]  ;;  %v396_v14 = vsub.f32 1.0, %v761_v7  ;;  %v443_v15 = vld [vmem:[%s1338_s7] sm:$0xff]  ;;  %v1362_v17 = vld [vmem:[%s1338_s7 + $0x8] sm:$0xff]  ;;  %vm415_vm4 = vcmp.eq.f32.partialorder %v1347_v1, 3.0 }
  0x98   : > { %v374_v13 = vsub.f32 1.0, %v372_v8  ;;  %v444_v16 = vld [vmem:[%s1338_s7 + $0x20] sm:$0xff]  ;;  %v766_v18 = vld [vmem:[%s1338_s7 + $0x10] sm:$0xff]  ;;  %v765_v21 = vld [vmem:[%s1338_s7 + $0x28] sm:$0xff]  ;;  %859 = vlog2.f32 %v372_v8  ;;  %vm416_vm5 = vcmp.eq.f32.partialorder %v1350_v3, 3.0  ;;  %v397_v29 = vsel %vm390_vm2, %v760_v6, %v395_v9  ;;  %s1474_s18 = smov (!%p353_p9, %s1057_s18), 1 }
  0x99   : > { %v373_v12 = vsel %vm367_vm1, %v369_v2, %v371_v5  ;;  %v767_v19 = vld [vmem:[%s1338_s7 + $0x30] sm:$0xff]  ;;  %v769_v22 = vld [vmem:[%s1338_s7 + $0x38] sm:$0xff]  ;;  %v772_v25 = vld [vmem:[%s1326_s5 + $0x20] sm:$0xff]  ;;  %v420_v30 = vsub.f32 1.0, %v762_v10  ;;  %v398_v35 = vsel %vm391_vm3, %v761_v7, %v396_v14  ;;  %v399_v36 = vsub.f32 1.0, %v397_v29  ;;  %s759_s11 = sshll.u32 %s1474_s18, 2 }
  0x9a   : > { %v770_v23 = vld [vmem:[%s1326_s5 + $0x18] sm:$0xff]  ;;  %v773_v26 = vld [vmem:[%s1326_s5 + $0x60] sm:$0xff]  ;;  %v774_v27 = vld [vmem:[%s1326_s5 + $0x28] sm:$0xff]  ;;  %v375_v28 = vsub.f32 1.0, %v373_v12  ;;  %861 = vlog2.f32 %v373_v12  ;;  %v376_v34 = vmul.f32 %v374_v13, %v374_v13  ;;  %v421_v37 = vsub.f32 1.0, %v763_v11  ;;  %s356_s21 = scalar_lea.vmem %s1434_s4, %s759_s11 }
  0x9b   : > { %v771_v24 = vld [vmem:[%s1326_s5 + $0x58] sm:$0xff]  ;;  %v775_v31 = vld [vmem:[%s1326_s5 + $0x68] sm:$0xff]  ;;  %v776_v32 = vld [vmem:[%s1326_s5 + $0x30] sm:$0xff]  ;;  %v466_v38 = vadd.f32 %v766_v18, %v443_v15  ;;  %v467_v39 = vadd.f32 %v767_v19, %v444_v16  ;;  %v468_v40 = vadd.f32 %v768_v20, %v1362_v17  ;;  %v472_v41 = vadd.f32 %v774_v27, %v770_v23 }
  0x9c   : > { %v777_v33 = vld [vmem:[%s1326_s5 + $0x70] sm:$0xff]  ;;  %v469_v42 = vadd.f32 %v769_v22, %v765_v21  ;;  %v473_v43 = vadd.f32 %v775_v31, %v771_v24  ;;  %v474_v44 = vadd.f32 %v776_v32, %v772_v25  ;;  %v377_v46 = vmul.f32 %v375_v28, %v375_v28 }
  0x9d   : > { %v475_v45 = vadd.f32 %v777_v33, %v773_v26  ;;  %v400_v47 = vsub.f32 1.0, %v398_v35  ;;  %863 = vlog2.f32 %v397_v29  ;;  %v478_v48 = vmin.f32 %v766_v18, %v774_v27 }
  0x9e   : > { %865 = vlog2.f32 %v398_v35  ;;  %v422_v49 = vsel %vm415_vm4, %v762_v10, %v420_v30  ;;  %v423_v50 = vsel %vm416_vm5, %v763_v11, %v421_v37  ;;  %v479_v51 = vmin.f32 %v767_v19, %v775_v31  ;;  %v1391_v19 = vld [vmem:[%s1326_s5 + $0x38] sm:$0xff] }
  0x9f   : > { %v470_v52 = vmul.f32 %v468_v40, %v466_v38  ;;  %v476_v53 = vmul.f32 %v474_v44, %v472_v41  ;;  %v480_v54 = vmin.f32 %v443_v15, %v770_v23  ;;  %v481_v55 = vmin.f32 %v444_v16, %v771_v24 }
  0xa0   : > { %v471_v56 = vmul.f32 %v469_v42, %v467_v39  ;;  %v477_v57 = vmul.f32 %v475_v45, %v473_v43  ;;  %v484_v58 = vmin.f32 %v1362_v17, %v772_v25  ;;  %v485_v59 = vmin.f32 %v765_v21, %v773_v26 }
  0xa1   : > { %v401_v60 = vmul.f32 %v399_v36, %v399_v36  ;;  %v424_v61 = vsub.f32 1.0, %v422_v49  ;;  %v482_v62 = vadd.f32 %v480_v54, %v478_v48  ;;  %v486_v63 = vmin.f32 %v768_v20, %v776_v32 }
  0xa2   : > { %v860_v0 = vpop.eup %859  ;;  %v425_v2 = vsub.f32 1.0, %v423_v50  ;;  %867 = vlog2.f32 %v422_v49  ;;  %v483_v4 = vadd.f32 %v481_v55, %v479_v51  ;;  %v487_v5 = vmin.f32 %v769_v22, %v777_v33  ;;  %v1394_v22 = vld [vmem:[%s1326_s5 + $0x78] sm:$0xff] }
  0xa3   : > { %v378_v7 = vmul.f32 %v376_v34, %v376_v34  ;;  %869 = vlog2.f32 %v423_v50  ;;  %v488_v8 = vadd.f32 %v486_v63, %v484_v58  ;;  %v492_v9 = vadd.f32 %v476_v53, %v470_v52 }
  0xa4   : > { %v862_v6 = vpop.eup %861  ;;  %v379_v10 = vmul.f32 %v377_v46, %v377_v46  ;;  %v402_v11 = vmul.f32 %v400_v47, %v400_v47  ;;  %v489_v12 = vadd.f32 %v487_v5, %v485_v59  ;;  %v493_v13 = vadd.f32 %v477_v57, %v471_v56 }
  0xa5   : > { %v403_v14 = vmul.f32 %v401_v60, %v401_v60  ;;  %v426_v15 = vmul.f32 %v424_v61, %v424_v61  ;;  %v490_v16 = vmul.f32 %v488_v8, %v482_v62  ;;  %v427_v17 = vmul.f32 %v425_v2, %v425_v2 }
  0xa6   : > { %v491_v18 = vmul.f32 %v489_v12, %v483_v4  ;;  %v380_v24 = vmul.f32 -2.0, %v378_v7  ;;  %v381_v25 = vmul.f32 -2.0, %v379_v10  ;;  %v404_v26 = vmul.f32 %v402_v11, %v402_v11 }
  0xa7   : > { %v864_v20 = vpop.eup %863  ;;  %v494_v21 = vsub.f32 %v492_v9, %v490_v16  ;;  %v405_v28 = vmul.f32 -2.0, %v403_v14  ;;  %v428_v29 = vmul.f32 %v426_v15, %v426_v15  ;;  %v534_v31 = vand.u32 2147483647, %v1391_v19  ;;  %v527_v14 = vld [vmem:[%s1340_s14 + $0x8] sm:$0xff] }
  0xa8   : > { %v866_v23 = vpop.eup %865  ;;  %v495_v27 = vsub.f32 %v493_v13, %v491_v18  ;;  %v383_v32 = vmul.f32 0.6931472, %v860_v0  ;;  %v429_v33 = vmul.f32 %v427_v17, %v427_v17  ;;  %v535_v35 = vand.u32 2147483647, %v1394_v22  ;;  %v526_v13 = vld [vmem:[%s1340_s14] sm:$0xff] }
  0xa9   : > { %v498_v30 = vadd.f32 1.0, %v494_v21  ;;  %v385_v36 = vmul.f32 0.6931472, %v862_v6  ;;  %v408_v37 = vmul.f32 0.6931472, %v864_v20  ;;  %v536_v38 = vsub.f32 0.0, %v534_v31 }
  0xaa   : > { %v499_v34 = vadd.f32 1.0, %v495_v27  ;;  %v406_v40 = vmul.f32 -2.0, %v404_v26  ;;  %v410_v41 = vmul.f32 0.6931472, %v866_v23  ;;  %v537_v42 = vsub.f32 0.0, %v535_v35 }
  0xab   : > { %871 = vrcp.f32 %v498_v30  ;;  %v538_v44 = vmul.f32 1.442695, %v536_v38  ;;  %v430_v45 = vmul.f32 -2.0, %v428_v29  ;;  %v431_v46 = vmul.f32 -2.0, %v429_v33 }
  0xac   : > { %v868_v39 = vpop.eup %867  ;;  %873 = vrcp.f32 %v499_v34  ;;  %v540_v47 = vmul.f32 1.442695, %v537_v42  ;;  %v386_v48 = vmul.f32 %v383_v32, %v380_v24  ;;  %v387_v49 = vmul.f32 %v385_v36, %v381_v25 }
  0xad   : > { %v870_v43 = vpop.eup %869  ;;  %v411_v50 = vmul.f32 %v408_v37, %v405_v28  ;;  %875 = vpow2.f32 %v538_v44  ;;  %v412_v51 = vmul.f32 %v410_v41, %v406_v40  ;;  %v433_v52 = vmul.f32 0.6931472, %v868_v39 }
  0xae   : > { %v435_v53 = vmul.f32 0.6931472, %v870_v43  ;;  %877 = vpow2.f32 %v540_v47  ;;  %v496_v54 = vadd.f32 1.0, %v490_v16  ;;  %v497_v55 = vadd.f32 1.0, %v491_v18 }
  0xaf   : > { %v552_v56 = vlaneseq  ;;  %v388_v57 = vadd.f32 %v387_v49, %v386_v48  ;;  %v413_v58 = vadd.f32 %v412_v51, %v411_v50  ;;  %v436_v59 = vmul.f32 %v433_v52, %v430_v45 }
  0xb0   : > { %v437_v60 = vmul.f32 %v435_v53, %v431_v46  ;;  %v556_v7 = vstv %s782_s25  ;;  %vm510_vm6 = vcmp.gt.f32.partialorder %v1347_v1, 0.0  ;;  %vm511_vm7 = vcmp.gt.f32.partialorder %v1350_v3, 0.0 }
  0xb1   : > { %v414_v2 = vadd.f32 %v413_v58, %v388_v57  ;;  %v553_v5 = vshrl.u32 %v552_v56, 7  ;;  %v555_v15 = vand.u32 127, %v552_v56  ;;  %v528_v18 = vmax.f32 %v1391_v19, 0.0 }
  0xb2   : > { %v438_v4 = vadd.f32 %v437_v60, %v436_v59  ;;  %v530_v20 = vmul.f32 %v1391_v19, %v526_v13  ;;  %v529_v23 = vmax.f32 %v1394_v22, 0.0  ;;  %v531_v24 = vmul.f32 %v1394_v22, %v527_v14 }
  0xb3   : > { %v557_v12 = vadd.s32 %v556_v7, %v553_v5  ;;  %v1074_v27 = vmov 0.0   ;;  %vm596_vm10 = vcmask 1041408  }
  0xb4   : > { %v439_v11 = vadd.f32 %v438_v4, %v414_v2  ;;  %v778_v28 = vsel %vm510_vm6, 1.0, %v1074_v27  ;;  %v779_v29 = vsel %vm511_vm7, 1.0, %v1074_v27  ;;  %v532_v32 = vsub.f32 %v528_v18, %v530_v20 }
  0xb5   : > { %v872_v61 = vpop.eup %871  ;;  %v558_v16 = vmul.u32 128, %v557_v12  ;;  %v519_v35 = vadd.f32 %v779_v29, %v778_v28  ;;  %v533_v19 = vsub.f32 %v529_v23, %v531_v24 }
  0xb6   : > { %v874_v62 = vpop.eup %873  ;;  %v501_v63 = vmul.f32 %v872_v61, %v496_v54  ;;  %v574_v17 = vrot.slane %v439_v11, 4 }
  0xb7   : > { %v503_v0 = vmul.f32 %v874_v62, %v497_v55  ;;  %v876_v6 = vpop.eup %875  ;;  %v559_v1 = vadd.s32 %v558_v16, %v555_v15 }
  0xb8   : > { %879 = vlog2.f32 %v501_v63  ;;  %v878_v8 = vpop.eup %877  ;;  %v542_v9 = vadd.f32 1.0, %v876_v6  ;;  %v575_v31 = vadd.f32 %v574_v17, %v439_v11 }
  0xb9   : > { %881 = vlog2.f32 %v503_v0  ;;  %v543_v10 = vadd.f32 1.0, %v878_v8  ;;  %vm560_vm8 = vcmp.lt.s32.totalorder %v559_v1, 256 }
  0xba   : > { %883 = vlog2.f32 %v542_v9  ;;  %v576_v22 = vrot.slane %v575_v31, 2 }
  0xbb   : > { %885 = vlog2.f32 %v543_v10 }
  0xbc   : > { %v577_v45 = vadd.f32 %v576_v22, %v575_v31 }
  0xbe   : > { %v578_v50 = vrot.slane %v577_v45, 1 }
  0xc0   : > { %v579_v55 = vadd.f32 %v578_v50, %v577_v45 }
  0xc2   : > { %v880_v21 = vpop.eup %879 }
  0xc3   : > { %v882_v25 = vpop.eup %881  ;;  %v505_v26 = vmul.f32 0.6931472, %v880_v21 }
  0xc4   : > { %v507_v30 = vmul.f32 0.6931472, %v882_v25  ;;  %v884_v33 = vpop.eup %883 }
  0xc5   : > { %v508_v3 = vsub.f32 0.0, %v505_v26  ;;  %v886_v36 = vpop.eup %885  ;;  %v545_v37 = vmul.f32 0.6931472, %v884_v33 }
  0xc6   : > { %v509_v34 = vsub.f32 0.0, %v507_v30  ;;  %v547_v39 = vmul.f32 0.6931472, %v886_v36 }
  0xc7   : > { %v548_v40 = vadd.f32 %v545_v37, %v532_v32 }
  0xc8   : > { %v518_v38 = vadd.f32 %v509_v34, %v508_v3  ;;  %v549_v42 = vadd.f32 %v547_v39, %v533_v19 }
  0xc9   : > { %v563_v43 = vsel %vm560_vm8, %v548_v40, 0.0 }
  0xca   : > { %v520_v41 = vmul.f32 %v519_v35, %v518_v38  ;;  %v564_v44 = vsel %vm560_vm8, %v549_v42, 0.0 }
  0xcb   : > { %v567_v47 = vadd.f32 %v564_v44, %v563_v43 }
  0xcc   : > { %v581_v46 = vrot.slane %v520_v41, 4 }
  0xcd   : > { %v588_v49 = vrot.slane %v567_v47, 4 }
  0xce   : > { %v582_v48 = vadd.f32 %v581_v46, %v520_v41 }
  0xcf   : > { %v589_v52 = vadd.f32 %v588_v49, %v567_v47 }
  0xd0   : > { %v583_v51 = vrot.slane %v582_v48, 2 }
  0xd1   : > { %v590_v54 = vrot.slane %v589_v52, 2 }
  0xd2   : > { %v584_v53 = vadd.f32 %v583_v51, %v582_v48 }
  0xd3   : > { %v591_v57 = vadd.f32 %v590_v54, %v589_v52 }
  0xd4   : > { %v585_v56 = vrot.slane %v584_v53, 1 }
  0xd5   : > { %v592_v59 = vrot.slane %v591_v57, 1 }
  0xd6   : > { %v586_v58 = vadd.f32 %v585_v56, %v584_v53 }
  0xd7   : > { %v593_v61 = vadd.f32 %v592_v59, %v591_v57 }
  0xd8   : > { %v595_v60 = vsel %vm594_vm9, %v579_v55, %v586_v58 }
  0xd9   : > { %v597_v62 = vsel %vm596_vm10, %v595_v60, %v593_v61 }
  0xda   : > { %598 = vst [vmem:[%s356_s21] sm:$0x7] %v597_v62 }
  0xdb PF: > { %s23_s20 = sadd.s32 1, %s1065_s20   ;;  %s1466_s18 = sld [smem:[#allocation13_spill]] }
  0xdc   : > { %p20_p4 = scmp.ge.s32.totalorder %s23_s20, 4   ;;  %s1467_s19 = sld [smem:[#allocation14_spill]] }
  0xdd   : > { %s1468_s15 = smov %s1049_s16  ;;  %s1469_s16 = smov %s1053_s17 }
  0xde   : > { %s1470_s17 = smov %s1147_s26  ;;  %22 = sbr.rel (!%p20_p4) target bundleno = 11 (0xb), region = 133 }
  0xe5   :  { %618 = vsyncpa [#allocation4], 1 }
  0xe6   :  { %620 = vsyncpa [#allocation4 + $0x1], 1 }
  0xe7   :  { %621 = vsyncpa [#allocation6], 1 }
  0xe8   :  { %623 = vsyncpa [#allocation6 + $0x1], 1 }
  0xe9   :  { %624 = vsyncpa [#allocation9], 1 }
  0xea   :  { %626 = vsyncpa [#allocation9 + $0x1], 1 }

</bundles_post_ra>
